<compile_context>
chip_gen: v6e
topology: v6e:2x2x1
jax: 0.10.0
libtpu: 0.0.40
codegen_flags: <defaults>
</compile_context>

<pallas_src>
import functools

import jax
import jax.numpy as jnp
from jax import lax
from jax.experimental import pallas as pl
from jax.experimental.pallas import tpu as pltpu

_LANE = 128


def _round_up(x: int, m: int) -> int:
    return ((x + m - 1) // m) * m


def _int_pow(x, n: int):
    """x ** n for non-negative integer n, unrolled at trace time (VPU muls)."""
    if n == 0:
        return jnp.ones_like(x)
    r = x
    for _ in range(n - 1):
        r = r * x
    return r


def _focal_loss_kernel(logits_ref, side_ref, out_ref, acc_ref, *,
                       gamma: float, n_valid: int, tn: int, steps: int):
    p = pl.program_id(0)          # parallel batch-slice axis (megacore)
    j = pl.program_id(1)          # reduction axis over row tiles
    last = pl.num_programs(1) - 1

    @pl.when(j == 0)
    def _():
        acc_ref[...] = jnp.zeros_like(acc_ref)

    x = logits_ref[...].astype(jnp.float32)          # (TN, C) logits, f32
    side = side_ref[...].astype(jnp.float32)         # (TN, 2): [alpha_t, tgt]
    a_t = side[:, 0:1]                               # (TN, 1) alpha[targets]
    t_f = side[:, 1:2]                               # (TN, 1) target id (f32)

    tn_blk, c = x.shape

    # --- numerically-stable log-sum-exp per row ---
    m = jnp.max(x, axis=-1, keepdims=True)                        # (TN, 1)
    lse = m + jnp.log(jnp.sum(jnp.exp(x - m), axis=-1,
                              keepdims=True))                     # (TN, 1)

    # --- gather target logit via one-hot select (exact float compare:
    #     class ids are exactly representable in f32) ---
    col = lax.broadcasted_iota(jnp.int32, (tn_blk, c), 1).astype(jnp.float32)
    logit_t = jnp.sum(jnp.where(col == t_f, x, 0.0), axis=-1,
                      keepdims=True)                              # (TN, 1)

    # --- weighted cross entropy, per-sample (reduction='none' semantics) ---
    ce = a_t * (lse - logit_t)                                    # (TN, 1)

    # --- focal modulation ---
    pt = jnp.exp(-ce)
    d = 1.0 - pt
    g = float(gamma)
    if g.is_integer() and g >= 0:
        mod = _int_pow(d, int(g))          # repeated mults, no log/exp on EUP
    else:
        # TODO(synk): guard d with an epsilon if a custom VJP is added later.
        mod = jnp.power(d, g)
    focal = mod * ce                                              # (TN, 1)

    # --- mask ragged / out-of-range rows out of the reduction.
    #     (The index map is clamped, so such rows carry garbage data, but the
    #     row id below is computed from the *unclamped* grid position.) ---
    row = (p * steps + j) * tn + lax.broadcasted_iota(jnp.int32, (tn_blk, 1), 0)
    focal = jnp.where(row < n_valid, focal, 0.0)

    acc_ref[...] += jnp.sum(focal).reshape(1, 1)

    @pl.when(j == last)
    def _():
        out_ref[...] = acc_ref[...].reshape(1, 1, 1)


def _vmem_capacity_bytes() -> int:
    try:
        return int(pltpu.get_tpu_info().vmem_capacity_bytes)
    except Exception:
        return 64 * 1024 * 1024      # conservative: v7x physical VMEM


def _working_set_bytes(tn: int, c: int, itemsize: int) -> int:
    """Lane-padding-aware VMEM working-set estimate for one pipeline stage."""
    c_pad = _round_up(c, _LANE)
    logits_blk = tn * c_pad * itemsize       # input block, lanes padded to 128
    side_blk = tn * _LANE * 4                # (tn, 2) side input, lane-padded
    f32_tmps = 3 * tn * c_pad * 4            # f32 upcast, exp(x-m), one-hot sel
    return 2 * (logits_blk + side_blk) + f32_tmps   # x2: double-buffered inputs


def _auto_row_tile(n: int, c: int, itemsize: int, budget_bytes: int) -> int:
    """Pick the row tile: ~2 MiB padded-f32 logits block, capped by VMEM."""
    c_pad = _round_up(c, _LANE)
    target_blk = 2 << 20
    tn = _round_up(max(8, target_blk // (c_pad * 4)), 8)
    tn = min(tn, 8192)
    tn = min(tn, _round_up(n, 8))
    tn = max(8, tn)
    while tn > 8 and _working_set_bytes(tn, c, itemsize) > budget_bytes:
        tn = max(8, _round_up(tn // 2, 8))
    return tn


def focal_loss(logits, targets, alpha=None, gamma=2.0, reduction="mean",
               row_tile=None):
    """Pallas TPU focal loss. logits: (N, C) float, targets: (N,) int.

    Note: reduction='mean' divides by N (matching the PyTorch module, which
    uses cross_entropy(reduction='none') followed by .mean()).
    """
    if reduction not in ("mean", "sum"):
        raise ValueError(f"reduction must be 'mean' or 'sum', got {reduction!r}")

    n, c = logits.shape
    targets = jnp.asarray(targets, jnp.int32)

    # alpha[targets] precomputed in the wrapper (cheap XLA gather); fused with
    # the target ids into one (N, 2) f32 side input -> one DMA per tile.
    if alpha is None:
        alpha_t = jnp.ones((n,), jnp.float32)
    else:
        alpha_t = jnp.asarray(alpha, jnp.float32)[targets]
    side = jnp.stack([alpha_t, targets.astype(jnp.float32)], axis=-1)  # (N, 2)

    itemsize = jnp.dtype(logits.dtype).itemsize
    vmem_cap = (_vmem_capacity_bytes() * 3) // 4     # ~48 MiB v7x, ~96 MiB v5e/v6e

    if row_tile is None:
        tn = _auto_row_tile(n, c, itemsize, vmem_cap)
    else:
        tn = _round_up(max(8, min(int(row_tile), _round_up(n, 8))), 8)

    total_tiles = pl.cdiv(n, tn)
    num_slices = 2 if total_tiles >= 2 else 1        # use both TCs on v7x
    steps = pl.cdiv(total_tiles, num_slices)
    last_tile = total_tiles - 1

    vmem_limit_bytes = int(min(
        vmem_cap,
        max(16 << 20, _working_set_bytes(tn, c, itemsize) + (4 << 20))))

    # No wrapper-side padding: ragged last tile and overflow tiles are handled
    # by clamping the block index (keeps DMAs in bounds) + in-kernel row mask.
    def logits_map(p, j):
        return (jnp.minimum(p * steps + j, last_tile), 0)

    def side_map(p, j):
        return (jnp.minimum(p * steps + j, last_tile), 0)

    kernel = functools.partial(_focal_loss_kernel, gamma=float(gamma),
                               n_valid=int(n), tn=int(tn), steps=int(steps))

    partials = pl.pallas_call(
        kernel,
        out_shape=jax.ShapeDtypeStruct((num_slices, 1, 1), jnp.float32),
        grid_spec=pltpu.PrefetchScalarGridSpec(
            num_scalar_prefetch=0,
            grid=(num_slices, steps),
            in_specs=[
                pl.BlockSpec((tn, c), logits_map),   # logits tile
                pl.BlockSpec((tn, 2), side_map),     # [alpha_t, target] tile
            ],
            out_specs=pl.BlockSpec((1, 1, 1), lambda p, j: (p, 0, 0)),
            scratch_shapes=[pltpu.VMEM((1, 1), jnp.float32)],  # per-slice acc
        ),
        compiler_params=pltpu.CompilerParams(
            dimension_semantics=("parallel", "arbitrary"),
            vmem_limit_bytes=vmem_limit_bytes,
        ),
    )(logits, side)

    total = jnp.sum(partials)
    if reduction == "mean":
        total = total / jnp.float32(n)
    return total


def _focal_loss_ref(logits, targets, alpha=None, gamma=2.0, reduction="mean"):
    """Pure-JAX reference mirroring F.cross_entropy(weight=alpha, 'none')."""
    n, c = logits.shape
    if alpha is None:
        alpha = jnp.ones((c,), jnp.float32)
    logp = jax.nn.log_softmax(logits.astype(jnp.float32), axis=-1)
    logp_t = jnp.take_along_axis(logp, targets[:, None], axis=-1)[:, 0]
    ce = -alpha[targets] * logp_t
    pt = jnp.exp(-ce)
    focal = (1.0 - pt) ** gamma * ce
    return focal.mean() if reduction == "mean" else focal.sum()


if __name__ == "__main__":
    key = jax.random.PRNGKey(0)
    k_logits, k_targets = jax.random.split(key)

    batch = 20          # deliberately not a multiple of the small row tile
    num_classes = 8

    logits = jax.random.normal(k_logits, (batch, num_classes), jnp.float32)
    targets = jax.random.randint(k_targets, (batch,), 0, num_classes,
                                 dtype=jnp.int32)
    # Deterministic per-class weights (alpha) — synthetic, not a checkpoint.
    alpha = jnp.linspace(0.5, 1.5, num_classes, dtype=jnp.float32)

    # Forced row_tile=8 -> grid (2, 2): exercises the 2-slice parallel split,
    # the clamped overflow tile and the masked ragged tile.
    out = jax.block_until_ready(
        focal_loss(logits, targets, alpha=alpha, gamma=2.0,
                   reduction="mean", row_tile=8))
    ref = _focal_loss_ref(logits, targets, alpha=alpha, gamma=2.0,
                          reduction="mean")
    assert jnp.allclose(out, ref, rtol=1e-5, atol=1e-5), (out, ref)

    # 'sum' reduction path.
    out_sum = jax.block_until_ready(
        focal_loss(logits, targets, alpha=alpha, gamma=2.0,
                   reduction="sum", row_tile=8))
    ref_sum = _focal_loss_ref(logits, targets, alpha=alpha, gamma=2.0,
                              reduction="sum")
    assert jnp.allclose(out_sum, ref_sum, rtol=1e-5, atol=1e-5), (out_sum,
                                                                  ref_sum)

    # Auto-sized tile path (single tile at this demo size), no alpha.
    out_auto = jax.block_until_ready(
        focal_loss(logits, targets, alpha=None, gamma=2.0, reduction="mean"))
    ref_auto = _focal_loss_ref(logits, targets, alpha=None, gamma=2.0,
                               reduction="mean")
    assert jnp.allclose(out_auto, ref_auto, rtol=1e-5, atol=1e-5), (out_auto,
                                                                    ref_auto)

    print("KERNEL_OK")
</pallas_src>

<mosaic_0001>
module attributes {stable_mosaic.version = 11 : i64} {
  func.func @_focal_loss_kernel(%arg0: i32, %arg1: i32, %arg2: memref<8x8xf32, #tpu.memory_space<vmem>>, %arg3: memref<8x2xf32, #tpu.memory_space<vmem>>, %arg4: memref<1x1x1xf32, #tpu.memory_space<vmem>>, %arg5: memref<1x1xf32, #tpu.memory_space<vmem>>) attributes {dimension_semantics = [#tpu.dimension_semantics<parallel>, #tpu.dimension_semantics<arbitrary>], iteration_bounds = array<i64: 2, 2>, scalar_prefetch = 0 : i64, scratch_operands = 1 : i64, tpu.core_type = #tpu.core_type<tc>, window_params = [{transform_indices = @transform_0, window_bounds = array<i64: 8, 8>}, {transform_indices = @transform_1, window_bounds = array<i64: 8, 2>}, {transform_indices = @transform_2, window_bounds = array<i64: 1, 1, 1>}]} {
    %c0_i32 = arith.constant 0 : i32
    %0 = arith.cmpi eq, %arg1, %c0_i32 : i32
    %1 = arith.extui %0 : i1 to i32
    %c0_i32_0 = arith.constant 0 : i32
    %2 = arith.cmpi ne, %1, %c0_i32_0 : i32
    scf.if %2 {
      %cst_16 = arith.constant 0.000000e+00 : f32
      %54 = vector.broadcast %cst_16 : f32 to vector<1x1xf32>
      %c0_17 = arith.constant 0 : index
      %c0_18 = arith.constant 0 : index
      %55 = vector.load %arg5[%c0_17, %c0_18] : memref<1x1xf32, #tpu.memory_space<vmem>>, vector<1x1xf32>
      tpu.vector_store %arg5[%c0_17, %c0_18], %54 {strides = array<i32>} : memref<1x1xf32, #tpu.memory_space<vmem>>, vector<1x1xf32>,
    } else {
    }
    %c0 = arith.constant 0 : index
    %c0_1 = arith.constant 0 : index
    %3 = vector.load %arg2[%c0, %c0_1] : memref<8x8xf32, #tpu.memory_space<vmem>>, vector<8x8xf32>
    %c0_2 = arith.constant 0 : index
    %c0_3 = arith.constant 0 : index
    %4 = vector.load %arg3[%c0_2, %c0_3] : memref<8x2xf32, #tpu.memory_space<vmem>>, vector<8x2xf32>
    %5 = vector.extract_strided_slice %4 {offsets = [0, 0], sizes = [8, 1], strides = [1, 1]} : vector<8x2xf32> to vector<8x1xf32>
    %6 = vector.extract_strided_slice %4 {offsets = [0, 1], sizes = [8, 1], strides = [1, 1]} : vector<8x2xf32> to vector<8x1xf32>
    %cst = arith.constant dense<0xFF800000> : vector<8xf32>
    %7 = vector.multi_reduction <maximumf>, %3, %cst [1] : vector<8x8xf32> to vector<8xf32>
    %8 = vector.shape_cast %7 : vector<8xf32> to vector<8x1xf32>
    %9 = vector.broadcast %8 : vector<8x1xf32> to vector<8x8xf32>
    %10 = arith.subf %3, %9 : vector<8x8xf32>
    %11 = math.exp %10 : vector<8x8xf32>
    %cst_4 = arith.constant dense<0.000000e+00> : vector<8xf32>
    %12 = vector.multi_reduction <add>, %11, %cst_4 [1] : vector<8x8xf32> to vector<8xf32>
    %13 = vector.shape_cast %12 : vector<8xf32> to vector<8x1xf32>
    %14 = math.log %13 : vector<8x1xf32>
    %15 = arith.addf %8, %14 : vector<8x1xf32>
    %16 = tpu.iota {dimensions = array<i32: 1>} : vector<8x8xi32>
    %17 = arith.sitofp %16 : vector<8x8xi32> to vector<8x8xf32>
    %18 = vector.broadcast %6 : vector<8x1xf32> to vector<8x8xf32>
    %19 = arith.cmpf oeq, %17, %18 : vector<8x8xf32>
    %cst_5 = arith.constant 0.000000e+00 : f32
    %20 = vector.broadcast %cst_5 : f32 to vector<8x8xf32>
    %21 = arith.select %19, %3, %20 : vector<8x8xi1>, vector<8x8xf32>
    %cst_6 = arith.constant dense<0.000000e+00> : vector<8xf32>
    %22 = vector.multi_reduction <add>, %21, %cst_6 [1] : vector<8x8xf32> to vector<8xf32>
    %23 = vector.shape_cast %22 : vector<8xf32> to vector<8x1xf32>
    %24 = arith.subf %15, %23 : vector<8x1xf32>
    %25 = arith.mulf %5, %24 : vector<8x1xf32>
    %cst_7 = arith.constant 0.000000e+00 : f32
    %26 = vector.broadcast %cst_7 : f32 to vector<8x1xf32>
    %27 = arith.subf %26, %25 : vector<8x1xf32>
    %28 = math.exp %27 : vector<8x1xf32>
    %cst_8 = arith.constant 1.000000e+00 : f32
    %29 = vector.broadcast %cst_8 : f32 to vector<8x1xf32>
    %30 = arith.subf %29, %28 : vector<8x1xf32>
    %31 = arith.mulf %30, %30 : vector<8x1xf32>
    %32 = arith.mulf %31, %25 : vector<8x1xf32>
    %c2_i32 = arith.constant 2 : i32
    %33 = arith.muli %arg0, %c2_i32 : i32
    %34 = arith.addi %33, %arg1 : i32
    %c8_i32 = arith.constant 8 : i32
    %35 = arith.muli %34, %c8_i32 : i32
    %36 = tpu.iota {dimensions = array<i32: 0>} : vector<8x1xi32>
    %37 = vector.broadcast %35 : i32 to vector<8x1xi32>
    %38 = arith.addi %37, %36 : vector<8x1xi32>
    %c20_i32 = arith.constant 20 : i32
    %39 = vector.broadcast %c20_i32 : i32 to vector<8x1xi32>
    %40 = arith.cmpi slt, %38, %39 : vector<8x1xi32>
    %cst_9 = arith.constant 0.000000e+00 : f32
    %41 = vector.broadcast %cst_9 : f32 to vector<8x1xf32>
    %42 = arith.select %40, %32, %41 : vector<8x1xi1>, vector<8x1xf32>
    %c0_10 = arith.constant 0 : index
    %c0_11 = arith.constant 0 : index
    %43 = vector.load %arg5[%c0_10, %c0_11] : memref<1x1xf32, #tpu.memory_space<vmem>>, vector<1x1xf32>
    %44 = vector.shape_cast %42 : vector<8x1xf32> to vector<1x8x1xf32>
    %cst_12 = arith.constant dense<0.000000e+00> : vector<1xf32>
    %45 = vector.multi_reduction <add>, %44, %cst_12 [1, 2] : vector<1x8x1xf32> to vector<1xf32>
    %46 = vector.shape_cast %45 : vector<1xf32> to vector<1x1x1xf32>
    %47 = vector.extract %46[0, 0, 0] : f32 from vector<1x1x1xf32>
    %48 = vector.broadcast %47 : f32 to vector<1x1xf32>
    %49 = arith.addf %43, %48 : vector<1x1xf32>
    %c0_13 = arith.constant 0 : index
    %c0_14 = arith.constant 0 : index
    %50 = vector.load %arg5[%c0_13, %c0_14] : memref<1x1xf32, #tpu.memory_space<vmem>>, vector<1x1xf32>
    tpu.vector_store %arg5[%c0_13, %c0_14], %49 {strides = array<i32>} : memref<1x1xf32, #tpu.memory_space<vmem>>, vector<1x1xf32>,
    %c1_i32 = arith.constant 1 : i32
    %51 = arith.cmpi eq, %arg1, %c1_i32 : i32
    %52 = arith.extui %51 : i1 to i32
    %c0_i32_15 = arith.constant 0 : i32
    %53 = arith.cmpi ne, %52, %c0_i32_15 : i32
    scf.if %53 {
      %c0_16 = arith.constant 0 : index
      %c0_17 = arith.constant 0 : index
      %54 = vector.load %arg5[%c0_16, %c0_17] : memref<1x1xf32, #tpu.memory_space<vmem>>, vector<1x1xf32>
      %55 = vector.shape_cast %54 : vector<1x1xf32> to vector<1x1x1xf32>
      %c0_18 = arith.constant 0 : index
      %c0_19 = arith.constant 0 : index
      %c0_20 = arith.constant 0 : index
      %56 = vector.load %arg4[%c0_18, %c0_19, %c0_20] : memref<1x1x1xf32, #tpu.memory_space<vmem>>, vector<1x1x1xf32>
      tpu.vector_store %arg4[%c0_18, %c0_19, %c0_20], %55 {strides = array<i32>} : memref<1x1x1xf32, #tpu.memory_space<vmem>>, vector<1x1x1xf32>,
    } else {
    }
    return
  }
  func.func @transform_0(%arg0: i32, %arg1: i32) -> (i32, i32) {
    %c2_i32 = arith.constant 2 : i32
    %0 = arith.muli %arg0, %c2_i32 : i32
    %1 = arith.addi %0, %arg1 : i32
    %c2_i32_0 = arith.constant 2 : i32
    %2 = arith.minsi %1, %c2_i32_0 : i32
    %c0_i32 = arith.constant 0 : i32
    %c0_i32_1 = arith.constant 0 : i32
    return %2, %c0_i32 : i32, i32
  }
  func.func @transform_1(%arg0: i32, %arg1: i32) -> (i32, i32) {
    %c2_i32 = arith.constant 2 : i32
    %0 = arith.muli %arg0, %c2_i32 : i32
    %1 = arith.addi %0, %arg1 : i32
    %c2_i32_0 = arith.constant 2 : i32
    %2 = arith.minsi %1, %c2_i32_0 : i32
    %c0_i32 = arith.constant 0 : i32
    %c0_i32_1 = arith.constant 0 : i32
    return %2, %c0_i32 : i32, i32
  }
  func.func @transform_2(%arg0: i32, %arg1: i32) -> (i32, i32, i32) {
    %c0_i32 = arith.constant 0 : i32
    %c0_i32_0 = arith.constant 0 : i32
    %c0_i32_1 = arith.constant 0 : i32
    return %arg0, %c0_i32, %c0_i32_0 : i32, i32, i32
  }
}

</mosaic_0001>

<bundles_post_ra>
// kernel: tpu_custom_call.1
= control target key start
LH: loop header
LB: loop body
LE: loop exit
PB: predicated region body
PF: predicated region fallthrough
CT: control target
= control target key end

     0   :  { %s498_s9 = smov 0   ;;  %s500_s10 = smov 0   ;;  %s573_s0 = inlined_call_operand.vmem [shape: f32[20,8], index: 0, kind: input, shape index: {}]   ;;  %s574_s1 = inlined_call_operand.vmem [shape: f32[20,2], index: 1, kind: input, shape index: {}]   ;;  %s575_s2 = inlined_call_operand.vmem [shape: f32[2,1,1], index: 2, kind: output, shape index: {}]  }
   0x1   :  { %s502_s11 = smov 0   ;;  %s504_s12 = smov 0  }
   0x2   :  { %s506_s13 = smov 0  }
   0x3 LB: > { %s21_s14 = sadd.s32 1, %s471_s11  ;;  %s24_s15 = sadd.s32 1, %s475_s12  ;;  %s479_s13 = sphi %s506_s13, %s12_s13   ;;  %s475_s12 = sphi %s504_s12, %s579_s12   ;;  %s471_s11 = sphi %s502_s11, %s578_s11   ;;  %s467_s10 = sphi %s500_s10, %s577_s10   ;;  %s463_s9 = sphi %s498_s9, %s576_s9  }
   0x4   : > { %p22_p0 = scmp.ge.s32.totalorder %s21_s14, 2  ;;  %p373_p1 = scmp.ge.s32.totalorder %s479_s13, 1 }
   0x5   : > { %p164_p2 = scmp.lt.s32.totalorder %s479_s13, 5 }
   0x6   : > { %s581_s14 = smov (%p22_p0, %s21_s14), 0  ;;  %s583_s15 = smov (!%p22_p0, %s24_s15), %s475_s12 }
   0x7   : > { %p165_p3 = pnand %p373_p1, %p164_p2  ;;  %p26_p4 = scmp.ge.s32.totalorder %s583_s15, 2 }
   0x8   : > { %s374_s16 = sshll.u32 (!%p165_p3), %s467_s10, 1  ;;  %p219_p5 = scmp.lt.s32.totalorder (!%p165_p3), %s467_s10, 1 }
   0x9   : > { %s585_s15 = smov (%p26_p4, %s583_s15), 0  ;;  %168 = sbr.rel (%p165_p3) target bundleno = 580 (0x244), region = 28 }
   0xa   : > { %s531_s17 = sadd.s32 (!%p165_p3), %s463_s9, %s374_s16  ;;  %p384_p7 = scmp.ne.s32.totalorder (!%p165_p3), %s463_s9, 0 }
   0xb   : > { %p197_p6 = scmp.lt.s32.totalorder (!%p165_p3), %s531_s17, 2 }
   0xe   : > { %s587_s10 = smov (!%p219_p5, %s467_s10), 1 }
   0xf   : > { %s198_s18 = scalar_select %p197_p6, %s531_s17, 2 }
  0x10   : > { %s221_s21 = scalar_lea.vmem %s575_s2, %s587_s10  ;;  %225 = sbr.rel (%p384_p7) target bundleno = 23 (0x17), region = 32 }
  0x11   : > { %s589_s18 = smov (!%p197_p6, %s198_s18), 2 }
  0x12   : > { %s378_s22 = sshll.u32 %s589_s18, 3 }
  0x13   : > { %s202_s25 = scalar_lea.vmem %s573_s0, %s378_s22  ;;  %s214_s28 = scalar_lea.vmem %s574_s1, %s378_s22 }
  0x15   : > { %vm226_vm0 = vcmask 0   ;;  %v481_v0 = vmov 0.0  }
  0x16   : > { %227 = vst.msk [vmem:[#allocation2] sm:$0x1] %vm226_vm0, %v481_v0 }
  0x17 PF: > { %v228_v1 = vld [vmem:[%s202_s25] sm:$0xff]  ;;  %vm230_vm1 = vcmask 64512   ;;  %v482_v3 = vmov 1   ;;  %v243_v8 = vlaneseq  ;;  %s386_s29 = sshll.u32 %s531_s17, 3  ;;  %vm274_vm4 = vcmask 7168   ;;  %p387_p8 = scmp.ne.s32.totalorder %s463_s9, 1 }
  0x18   : > { %v231_v2 = vsel %vm230_vm1, %v228_v1, -inf  ;;  %434 = vset.pattern.permute.xlu0 %v482_v3  ;;  %v229_v4 = vld [vmem:[%s214_s28] sm:$0xff]  ;;  %v269_v26 = vstv %s386_s29  ;;  %vm287_vm5 = vcmask 0  }
  0x19   : > { %232 = vmax.xlane.f32.xlu0 %v231_v2  ;;  %v244_v9 = vand.u32 127, %v243_v8  ;;  %v268_v25 = vshrl.u32 %v243_v8, 7 }
  0x1b   : > { %v245_v10 = vcvt.s32.f32 %v244_v9  ;;  %v270_v28 = vadd.s32 %v269_v26, %v268_v25 }
  0x1d   : > { %vm271_vm3 = vcmp.lt.s32.totalorder %v270_v28, 20  ;;  %v273_v41 = vld [vmem:[#allocation2] sm:$0x1] }
  0x2f   : > { %248 = vperm.xlu0 %434, %v229_v4  }
  0xa2   : > { %v233_v5 = vpop.xlane.xlu0 %232 }
  0xa3   : > { %v234_v6 = vsub.f32 %v228_v1, %v233_v5 }
  0xa5   : > { %v235_v7 = vmul.f32 1.442695, %v234_v6 }
  0xa7   : > { %435 = vpow2.f32 %v235_v7 }
  0xaa   : > { %v249_v11 = vpop.permute.xlu0 %248 }
  0xab   : > { %vm251_vm2 = vcmp.eq.f32.partialorder %v245_v10, %v249_v11 }
  0xac   : > { %v252_v13 = vsel %vm251_vm2, %v228_v1, 0.0 }
  0xad   : > { %v253_v15 = vsel %vm230_vm1, %v252_v13, 0.0 }
  0xb4   : > { %v436_v12 = vpop.eup %435 }
  0xb5   : > { %v237_v14 = vsel %vm230_vm1, %v436_v12, 0.0 }
  0xb6   : > { %238 = vadd.xlane.f32.xlu1 %v237_v14 }
  0xba   : > { %254 = vadd.xlane.f32.xlu1 %v253_v15 }
 0x13f   : > { %v239_v16 = vpop.xlane.xlu1 %238 }
 0x140   : > { %437 = vlog2.f32 %v239_v16 }
 0x143   : > { %v255_v19 = vpop.xlane.xlu1 %254 }
 0x14d   : > { %v438_v17 = vpop.eup %437 }
 0x14e   : > { %v241_v18 = vmul.f32 0.6931472, %v438_v17 }
 0x150   : > { %v242_v20 = vadd.f32 %v241_v18, %v233_v5 }
 0x152   : > { %v256_v21 = vsub.f32 %v242_v20, %v255_v19 }
 0x154   : > { %v257_v22 = vmul.f32 %v256_v21, %v229_v4 }
 0x156   : > { %v258_v23 = vsub.f32 0.0, %v257_v22 }
 0x158   : > { %v259_v24 = vmul.f32 1.442695, %v258_v23 }
 0x15a   : > { %439 = vpow2.f32 %v259_v24 }
 0x167   : > { %v440_v27 = vpop.eup %439 }
 0x168   : > { %v261_v29 = vsub.f32 1.0, %v440_v27 }
 0x16a   : > { %v262_v30 = vmul.f32 %v261_v29, %v261_v29 }
 0x16c   : > { %v263_v31 = vmul.f32 %v262_v30, %v257_v22 }
 0x16e   : > { %v272_v32 = vsel %vm271_vm3, %v263_v31, 0.0 }
 0x16f   : > { %v275_v33 = vsel %vm274_vm4, %v272_v32, 0.0 }
 0x170   : > { %276 = vadd.xlane.f32.xlu1 %v275_v33 }
 0x1f9   : > { %v277_v34 = vpop.xlane.xlu1 %276 }
 0x1fa   : > { %v278_v35 = vrot.slane %v277_v34, 4 }
 0x1fc   : > { %v279_v36 = vadd.f32 %v278_v35, %v277_v34 }
 0x1fe   : > { %v280_v37 = vrot.slane %v279_v36, 2 }
 0x200   : > { %v281_v38 = vadd.f32 %v280_v37, %v279_v36 }
 0x202   : > { %v282_v39 = vrot.slane %v281_v38, 1 }
 0x204   : > { %v283_v40 = vadd.f32 %v282_v39, %v281_v38 }
 0x206   : > { %390 = vpush %v283_v40 }
 0x237   : > { %s391_s30 = spop %390  ;;  %292 = sbr.rel (%p387_p8) target bundleno = 580 (0x244), region = 36 }
 0x238   : > { %v285_v42 = vstv %s391_s30 }
 0x239   : > { %v286_v43 = vadd.f32 %v285_v42, %v273_v41 }
 0x23b   : > { %288 = vst.msk [vmem:[#allocation2] sm:$0x1] %vm287_vm5, %v286_v43 }
 0x242   : > { %v293_v44 = vld [vmem:[#allocation2] sm:$0x1] }
 0x243   : > { %294 = vst.msk [vmem:[%s221_s21] sm:$0x1] %vm287_vm5, %v293_v44 }
 0x244 PF: > { %s12_s13 = sadd.s32 1, %s479_s13   ;;  %s576_s9 = smov %s471_s11 }
 0x245   : > { %p9_p9 = scmp.ge.s32.totalorder %s12_s13, 6   ;;  %s577_s10 = smov %s475_s12 }
 0x246   : > { %s578_s11 = smov %s581_s14  ;;  %s579_s12 = smov %s585_s15 }
 0x247   :  { %11 = sbr.rel (!%p9_p9) target bundleno = 3 (0x3), region = 69 }

</bundles_post_ra>
